<compile_context>
chip_gen: v7x
topology: tpu7x:2x2x1
jax: 0.10.0
libtpu: 0.0.40
codegen_flags: <defaults>
</compile_context>

<pallas_src>
import functools
import math

import jax
import jax.numpy as jnp
from jax import lax
from jax.experimental import pallas as pl
from jax.experimental.pallas import tpu as pltpu


def _round_up(x, m):
    return ((x + m - 1) // m) * m


def attention_kernel(emb_ref, face_ref, wq_ref, bq_ref, wkT_ref, bk_ref,
                     wv_ref, bv_ref, o_ref, *, true_seq, mxu_dtype):
    # emb_ref : (TB, E_pad)             face_ref: (TB, S_pad, F_pad)
    # wq_ref  : (E_pad, F_pad)          bq_ref  : (1, F_pad)   (scale pre-folded)
    # wkT_ref : (F_pad, F_pad) = Wk^T   bk_ref  : (1, F_pad)
    # wv_ref  : (F_pad, F_pad)          bv_ref  : (1, F_pad)
    # o_ref   : (TB, F_pad)
    S = face_ref.shape[1]

    emb = emb_ref[...]
    face_f32 = face_ref[...].astype(jnp.float32)   # VPU upcast; HBM/DMA stays narrow

    # q projection (MXU). 1/sqrt(F) is already folded into Wq / bq.
    q = jnp.dot(emb, wq_ref[...], preferred_element_type=jnp.float32) + bq_ref[...]

    # scores[b,s] = q[b] . (face[b,s] @ Wk + bk)
    #             = (q[b] @ Wk^T) . face[b,s]  +  q[b] . bk
    qk_lhs = q.astype(mxu_dtype) if mxu_dtype is not None else q
    qk = jnp.dot(qk_lhs, wkT_ref[...], preferred_element_type=jnp.float32)   # (TB, F)
    q_bk = jnp.sum(q * bk_ref[...], axis=-1, keepdims=True)                  # (TB, 1)

    # VPU multiply + XLU lane-reduce (no M=1 MXU matmuls).
    scores = jnp.sum(qk[:, None, :] * face_f32, axis=-1) + q_bk              # (TB, S)

    if true_seq != S:  # mask zero-padded key rows before softmax
        pos = lax.broadcasted_iota(jnp.int32, scores.shape, 1)
        scores = jnp.where(pos < true_seq, scores, -1e30)

    # Softmax over the sequence axis (f32); reciprocal on the EUP slot.
    m = jnp.max(scores, axis=-1, keepdims=True)
    p = jnp.exp(scores - m)
    denom = jnp.sum(p, axis=-1, keepdims=True)
    inv = pl.reciprocal(denom, approx=True)
    inv = inv * (2.0 - denom * inv)            # one Newton step -> ~f32 accuracy
    w = p * inv                                 # (TB, S)

    # attended[b] = (sum_s w[b,s] * face[b,s]) @ Wv + bv   (exact since sum_s w = 1)
    ctx = jnp.sum(w[:, :, None] * face_f32, axis=1)                          # (TB, F)
    ctx_lhs = ctx.astype(mxu_dtype) if mxu_dtype is not None else ctx
    attended = jnp.dot(ctx_lhs, wv_ref[...],
                       preferred_element_type=jnp.float32) + bv_ref[...]
    o_ref[...] = attended.astype(o_ref.dtype)


@functools.partial(jax.jit, static_argnames=("feat_dim", "block_b", "mxu_dtype"))
def _attention_impl(emb, face, wq, bq, wkT, bk, wv, bv, *,
                    feat_dim, block_b, mxu_dtype):
    B, E = emb.shape
    _, S, F = face.shape
    assert F == feat_dim
    out_dtype = emb.dtype

    E_pad, F_pad = wq.shape
    S_pad = _round_up(S, 8)
    in_dtype = jnp.dtype(mxu_dtype) if mxu_dtype is not None else jnp.dtype(emb.dtype)

    # ---- per-generation VMEM budget and batch-tile selection -----------------
    try:
        vmem_cap = int(pltpu.get_tpu_info().vmem_capacity_bytes)
    except Exception:
        vmem_cap = 64 * 1024 * 1024
    # ~48 MiB on v7x (64 MiB physical), ~96 MiB on v5e/v6e (128 MiB physical).
    vmem_budget = min(vmem_cap * 3 // 4, 100 * 1024 * 1024)

    if block_b is None:
        block_b = 256                           # MXU row target (v6e/v7x)
    block_b = max(8, _round_up(block_b, 8))
    B8 = _round_up(B, 8)
    # Keep at least 2 grid steps when the batch allows it (two v7x TensorCores).
    block_b = min(block_b, max(8, _round_up(-(-B8 // 2), 8)))

    w_itemsize = in_dtype.itemsize
    weight_bytes = (E_pad * F_pad + 2 * F_pad * F_pad) * w_itemsize + 3 * F_pad * 4

    def _step_bytes(bb):  # double-buffered I/O tiles + f32 in-kernel temporaries
        face_tile = bb * S_pad * F_pad * w_itemsize
        emb_tile = bb * E_pad * w_itemsize
        out_tile = bb * F_pad * jnp.dtype(out_dtype).itemsize
        temps = bb * S_pad * F_pad * 4 + bb * (4 * F_pad + 4 * S_pad) * 4
        return 2 * (face_tile + emb_tile + out_tile) + temps

    while block_b > 8 and weight_bytes + _step_bytes(block_b) > vmem_budget:
        block_b -= 8

    B_pad = _round_up(B, block_b)
    grid = (B_pad // block_b,)

    # ---- pad activations (fused with the bf16 cast when requested) -----------
    emb_p = jnp.pad(emb.astype(in_dtype), ((0, B_pad - B), (0, E_pad - E)))
    face_p = jnp.pad(face.astype(in_dtype),
                     ((0, B_pad - B), (0, S_pad - S), (0, F_pad - F)))

    kernel = functools.partial(attention_kernel, true_seq=S, mxu_dtype=mxu_dtype)

    flops = int(2 * B_pad * E_pad * F_pad            # q projection
                + 2 * B_pad * F_pad * F_pad          # q @ Wk^T
                + 2 * B_pad * F_pad * F_pad          # ctx @ Wv
                + 2 * 2 * B_pad * S_pad * F_pad)     # scores + weighted sum
    in_arrays = (emb_p, face_p, wq, bq, wkT, bk, wv, bv)
    bytes_accessed = int(sum(a.size * a.dtype.itemsize for a in in_arrays)
                         + B_pad * F_pad * jnp.dtype(out_dtype).itemsize)
    cost = pl.CostEstimate(flops=flops,
                           transcendentals=int(B_pad * S_pad + B_pad),
                           bytes_accessed=bytes_accessed)

    # Weights / biases: constant index_map + single buffer (VMEM residents).
    resident = functools.partial(pl.BlockSpec, pipeline_mode=pl.Buffered(1))

    out_p = pl.pallas_call(
        kernel,
        out_shape=jax.ShapeDtypeStruct((B_pad, F_pad), out_dtype),
        grid_spec=pltpu.PrefetchScalarGridSpec(
            num_scalar_prefetch=0,
            grid=grid,
            in_specs=[
                pl.BlockSpec((block_b, E_pad), lambda i: (i, 0)),             # emb tile
                # TODO(synk): on v5e, if the face DMA is still exposed, add
                # pipeline_mode=pl.Buffered(3) here (VMEM headroom is ample there).
                pl.BlockSpec((block_b, S_pad, F_pad), lambda i: (i, 0, 0)),   # face tile
                resident((E_pad, F_pad), lambda i: (0, 0)),                   # Wq
                resident((1, F_pad), lambda i: (0, 0)),                       # bq
                resident((F_pad, F_pad), lambda i: (0, 0)),                   # Wk^T
                resident((1, F_pad), lambda i: (0, 0)),                       # bk
                resident((F_pad, F_pad), lambda i: (0, 0)),                   # Wv
                resident((1, F_pad), lambda i: (0, 0)),                       # bv
            ],
            out_specs=pl.BlockSpec((block_b, F_pad), lambda i: (i, 0)),
        ),
        compiler_params=pltpu.CompilerParams(
            dimension_semantics=("parallel",),       # batch axis -> both TCs on v7x
            vmem_limit_bytes=int(vmem_budget),
        ),
        cost_estimate=cost,
    )(*in_arrays)

    # Strip padding, restore the (B, 1, F) shape of the PyTorch module.
    return out_p[:B, :F][:, None, :]


def attention_mechanism(emotion_embedding, face_feat, params, *, block_b=None):
    """Returns attended_feat of shape (B, 1, feat_dim), matching the PyTorch module."""
    return _attention_impl(
        emotion_embedding, face_feat,
        params["wq"], params["bq"], params["wkT"], params["bk"],
        params["wv"], params["bv"],
        feat_dim=params["feat_dim"], block_b=block_b,
        mxu_dtype=params["mxu_dtype"])


def prepare_params(wq, bq, wk, bk, wv, bv, *, mxu_dtype=None):
    """One-time (outside the hot path) weight preparation:
       * pad to lane-dense (multiple-of-128) shapes,
       * fold the 1/sqrt(feat_dim) attention scale into Wq / bq,
       * pre-transpose Wk so the kernel computes q' = q @ Wk^T directly,
       * optionally cast the big weight matrices to the MXU feed dtype
         (biases stay f32).
       Weights are stored as (in_features, out_features): y = x @ W + b."""
    embed_dim, feat_dim = wq.shape
    E_pad = _round_up(embed_dim, 128)
    F_pad = _round_up(feat_dim, 128)
    scale = 1.0 / math.sqrt(feat_dim)

    wq_p = jnp.pad(wq * scale, ((0, E_pad - embed_dim), (0, F_pad - feat_dim)))
    bq_p = jnp.pad(bq.reshape(1, feat_dim) * scale, ((0, 0), (0, F_pad - feat_dim)))
    wkT_p = jnp.pad(wk.T, ((0, F_pad - feat_dim), (0, F_pad - feat_dim)))
    bk_p = jnp.pad(bk.reshape(1, feat_dim), ((0, 0), (0, F_pad - feat_dim)))
    wv_p = jnp.pad(wv, ((0, F_pad - feat_dim), (0, F_pad - feat_dim)))
    bv_p = jnp.pad(bv.reshape(1, feat_dim), ((0, 0), (0, F_pad - feat_dim)))
    if mxu_dtype is not None:
        wq_p = wq_p.astype(mxu_dtype)
        wkT_p = wkT_p.astype(mxu_dtype)
        wv_p = wv_p.astype(mxu_dtype)
    bq_p = bq_p.astype(jnp.float32)
    bk_p = bk_p.astype(jnp.float32)
    bv_p = bv_p.astype(jnp.float32)
    return dict(wq=wq_p, bq=bq_p, wkT=wkT_p, bk=bk_p, wv=wv_p, bv=bv_p,
                feat_dim=feat_dim, mxu_dtype=mxu_dtype)


def init_params(key, embed_dim, feat_dim, dtype=jnp.float32):
    """nn.Linear default init: U(-1/sqrt(fan_in), +).  Weights stored as (in, out)."""
    keys = jax.random.split(key, 6)
    bq_bound = 1.0 / math.sqrt(embed_dim)
    bf_bound = 1.0 / math.sqrt(feat_dim)
    wq = jax.random.uniform(keys[0], (embed_dim, feat_dim), dtype, -bq_bound, bq_bound)
    bq = jax.random.uniform(keys[1], (1, feat_dim), dtype, -bq_bound, bq_bound)
    wk = jax.random.uniform(keys[2], (feat_dim, feat_dim), dtype, -bf_bound, bf_bound)
    bk = jax.random.uniform(keys[3], (1, feat_dim), dtype, -bf_bound, bf_bound)
    wv = jax.random.uniform(keys[4], (feat_dim, feat_dim), dtype, -bf_bound, bf_bound)
    bv = jax.random.uniform(keys[5], (1, feat_dim), dtype, -bf_bound, bf_bound)
    return wq, bq, wk, bk, wv, bv


def reference(emb, face, wq, bq, wk, bk, wv, bv):
    q = emb @ wq + bq                                   # (B, F)
    k = face @ wk + bk                                  # (B, S, F)
    v = face @ wv + bv                                  # (B, S, F)
    scores = jnp.einsum('bf,bsf->bs', q, k) / math.sqrt(face.shape[-1])
    w = jax.nn.softmax(scores, axis=-1)
    att = jnp.einsum('bs,bsf->bf', w, v)
    return att[:, None, :]                              # (B, 1, F)


if __name__ == "__main__":
    key = jax.random.PRNGKey(0)
    k_emb, k_face, k_par = jax.random.split(key, 3)

    batch, seq, embed_dim, feat_dim = 16, 10, 32, 64
    emb = jax.random.normal(k_emb, (batch, embed_dim), dtype=jnp.float32)
    face = jax.random.normal(k_face, (batch, seq, feat_dim), dtype=jnp.float32)
    raw = init_params(k_par, embed_dim, feat_dim)

    ref = reference(emb, face, *raw)

    # f32 path (tight check).
    params_f32 = prepare_params(*raw)
    out = attention_mechanism(emb, face, params_f32)
    out = jax.block_until_ready(out)
    assert out.shape == (batch, 1, feat_dim)
    assert jnp.allclose(out, ref, atol=1e-3, rtol=1e-3), "f32 mismatch vs reference"

    # bf16 MXU-feed path with f32 accumulation (looser tolerance).
    params_bf16 = prepare_params(*raw, mxu_dtype=jnp.bfloat16)
    out_bf16 = attention_mechanism(emb, face, params_bf16)
    out_bf16 = jax.block_until_ready(out_bf16)
    assert jnp.allclose(out_bf16, ref, atol=8e-2, rtol=8e-2), "bf16 mismatch vs reference"

    print("KERNEL_OK")
</pallas_src>

<mosaic_0001>
module attributes {stable_mosaic.version = 11 : i64} {
  func.func @attention_kernel(%arg0: i32, %arg1: memref<8x128xf32, #tpu.memory_space<vmem>>, %arg2: memref<8x16x128xf32, #tpu.memory_space<vmem>>, %arg3: memref<128x128xf32, #tpu.memory_space<vmem>>, %arg4: memref<1x128xf32, #tpu.memory_space<vmem>>, %arg5: memref<128x128xf32, #tpu.memory_space<vmem>>, %arg6: memref<1x128xf32, #tpu.memory_space<vmem>>, %arg7: memref<128x128xf32, #tpu.memory_space<vmem>>, %arg8: memref<1x128xf32, #tpu.memory_space<vmem>>, %arg9: memref<8x128xf32, #tpu.memory_space<vmem>>) attributes {dimension_semantics = [#tpu.dimension_semantics<parallel>], iteration_bounds = array<i64: 2>, scalar_prefetch = 0 : i64, scratch_operands = 0 : i64, tpu.core_type = #tpu.core_type<tc>, window_params = [{transform_indices = @transform_0, window_bounds = array<i64: 8, 128>}, {transform_indices = @transform_1, window_bounds = array<i64: 8, 16, 128>}, {pipeline_mode = #tpu.pipeline_mode<synchronous>, transform_indices = @transform_2, window_bounds = array<i64: 128, 128>}, {pipeline_mode = #tpu.pipeline_mode<synchronous>, transform_indices = @transform_3, window_bounds = array<i64: 1, 128>}, {pipeline_mode = #tpu.pipeline_mode<synchronous>, transform_indices = @transform_4, window_bounds = array<i64: 128, 128>}, {pipeline_mode = #tpu.pipeline_mode<synchronous>, transform_indices = @transform_5, window_bounds = array<i64: 1, 128>}, {pipeline_mode = #tpu.pipeline_mode<synchronous>, transform_indices = @transform_6, window_bounds = array<i64: 128, 128>}, {pipeline_mode = #tpu.pipeline_mode<synchronous>, transform_indices = @transform_7, window_bounds = array<i64: 1, 128>}, {transform_indices = @transform_8, window_bounds = array<i64: 8, 128>}]} {
    %c0 = arith.constant 0 : index
    %c0_0 = arith.constant 0 : index
    %0 = vector.load %arg1[%c0, %c0_0] : memref<8x128xf32, #tpu.memory_space<vmem>>, vector<8x128xf32>
    %c0_1 = arith.constant 0 : index
    %c0_2 = arith.constant 0 : index
    %c0_3 = arith.constant 0 : index
    %1 = vector.load %arg2[%c0_1, %c0_2, %c0_3] : memref<8x16x128xf32, #tpu.memory_space<vmem>>, vector<8x16x128xf32>
    %c0_4 = arith.constant 0 : index
    %c0_5 = arith.constant 0 : index
    %2 = vector.load %arg3[%c0_4, %c0_5] : memref<128x128xf32, #tpu.memory_space<vmem>>, vector<128x128xf32>
    %cst = arith.constant dense<0.000000e+00> : vector<8x128xf32>
    %3 = tpu.matmul %0, %2, %cst {dimension_numbers = #tpu.dot_dimension_numbers<[1], [0], [0], [1], [0, 0, 1, 1], [], []>} : vector<8x128xf32>, vector<128x128xf32>, vector<8x128xf32> -> vector<8x128xf32>
    %c0_6 = arith.constant 0 : index
    %c0_7 = arith.constant 0 : index
    %4 = vector.load %arg4[%c0_6, %c0_7] : memref<1x128xf32, #tpu.memory_space<vmem>>, vector<1x128xf32>
    %5 = vector.broadcast %4 : vector<1x128xf32> to vector<8x128xf32>
    %6 = arith.addf %3, %5 : vector<8x128xf32>
    %c0_8 = arith.constant 0 : index
    %c0_9 = arith.constant 0 : index
    %7 = vector.load %arg5[%c0_8, %c0_9] : memref<128x128xf32, #tpu.memory_space<vmem>>, vector<128x128xf32>
    %cst_10 = arith.constant dense<0.000000e+00> : vector<8x128xf32>
    %8 = tpu.matmul %6, %7, %cst_10 {dimension_numbers = #tpu.dot_dimension_numbers<[1], [0], [0], [1], [0, 0, 1, 1], [], []>} : vector<8x128xf32>, vector<128x128xf32>, vector<8x128xf32> -> vector<8x128xf32>
    %c0_11 = arith.constant 0 : index
    %c0_12 = arith.constant 0 : index
    %9 = vector.load %arg6[%c0_11, %c0_12] : memref<1x128xf32, #tpu.memory_space<vmem>>, vector<1x128xf32>
    %10 = vector.broadcast %9 : vector<1x128xf32> to vector<8x128xf32>
    %11 = arith.mulf %6, %10 : vector<8x128xf32>
    %cst_13 = arith.constant dense<0.000000e+00> : vector<8xf32>
    %12 = vector.multi_reduction <add>, %11, %cst_13 [1] : vector<8x128xf32> to vector<8xf32>
    %13 = vector.shape_cast %12 : vector<8xf32> to vector<8x1xf32>
    %14 = vector.shape_cast %8 : vector<8x128xf32> to vector<8x1x128xf32>
    %15 = vector.broadcast %14 : vector<8x1x128xf32> to vector<8x16x128xf32>
    %16 = arith.mulf %15, %1 : vector<8x16x128xf32>
    %cst_14 = arith.constant dense<0.000000e+00> : vector<8x16xf32>
    %17 = vector.multi_reduction <add>, %16, %cst_14 [2] : vector<8x16x128xf32> to vector<8x16xf32>
    %18 = vector.broadcast %13 : vector<8x1xf32> to vector<8x16xf32>
    %19 = arith.addf %17, %18 : vector<8x16xf32>
    %20 = tpu.iota {dimensions = array<i32: 1>} : vector<8x16xi32>
    %c10_i32 = arith.constant 10 : i32
    %21 = vector.broadcast %c10_i32 : i32 to vector<8x16xi32>
    %22 = arith.cmpi slt, %20, %21 : vector<8x16xi32>
    %cst_15 = arith.constant -1.000000e+30 : f32
    %23 = vector.broadcast %cst_15 : f32 to vector<8x16xf32>
    %24 = arith.select %22, %19, %23 : vector<8x16xi1>, vector<8x16xf32>
    %cst_16 = arith.constant dense<0xFF800000> : vector<8xf32>
    %25 = vector.multi_reduction <maximumf>, %24, %cst_16 [1] : vector<8x16xf32> to vector<8xf32>
    %26 = vector.shape_cast %25 : vector<8xf32> to vector<8x1xf32>
    %27 = vector.broadcast %26 : vector<8x1xf32> to vector<8x16xf32>
    %28 = arith.subf %24, %27 : vector<8x16xf32>
    %29 = math.exp %28 : vector<8x16xf32>
    %cst_17 = arith.constant dense<0.000000e+00> : vector<8xf32>
    %30 = vector.multi_reduction <add>, %29, %cst_17 [1] : vector<8x16xf32> to vector<8xf32>
    %31 = vector.shape_cast %30 : vector<8xf32> to vector<8x1xf32>
    %32 = tpu.reciprocal %31 {approx = true} : vector<8x1xf32> -> vector<8x1xf32>
    %33 = arith.mulf %31, %32 : vector<8x1xf32>
    %cst_18 = arith.constant 2.000000e+00 : f32
    %34 = vector.broadcast %cst_18 : f32 to vector<8x1xf32>
    %35 = arith.subf %34, %33 : vector<8x1xf32>
    %36 = arith.mulf %32, %35 : vector<8x1xf32>
    %37 = vector.broadcast %36 : vector<8x1xf32> to vector<8x16xf32>
    %38 = arith.mulf %29, %37 : vector<8x16xf32>
    %39 = vector.shape_cast %38 : vector<8x16xf32> to vector<8x16x1xf32>
    %40 = vector.broadcast %39 : vector<8x16x1xf32> to vector<8x16x128xf32>
    %41 = arith.mulf %40, %1 : vector<8x16x128xf32>
    %cst_19 = arith.constant dense<0.000000e+00> : vector<8x128xf32>
    %42 = vector.multi_reduction <add>, %41, %cst_19 [1] : vector<8x16x128xf32> to vector<8x128xf32>
    %c0_20 = arith.constant 0 : index
    %c0_21 = arith.constant 0 : index
    %43 = vector.load %arg7[%c0_20, %c0_21] : memref<128x128xf32, #tpu.memory_space<vmem>>, vector<128x128xf32>
    %cst_22 = arith.constant dense<0.000000e+00> : vector<8x128xf32>
    %44 = tpu.matmul %42, %43, %cst_22 {dimension_numbers = #tpu.dot_dimension_numbers<[1], [0], [0], [1], [0, 0, 1, 1], [], []>} : vector<8x128xf32>, vector<128x128xf32>, vector<8x128xf32> -> vector<8x128xf32>
    %c0_23 = arith.constant 0 : index
    %c0_24 = arith.constant 0 : index
    %45 = vector.load %arg8[%c0_23, %c0_24] : memref<1x128xf32, #tpu.memory_space<vmem>>, vector<1x128xf32>
    %46 = vector.broadcast %45 : vector<1x128xf32> to vector<8x128xf32>
    %47 = arith.addf %44, %46 : vector<8x128xf32>
    %c0_25 = arith.constant 0 : index
    %c0_26 = arith.constant 0 : index
    %48 = vector.load %arg9[%c0_25, %c0_26] : memref<8x128xf32, #tpu.memory_space<vmem>>, vector<8x128xf32>
    tpu.vector_store %arg9[%c0_25, %c0_26], %47 {strides = array<i32>} : memref<8x128xf32, #tpu.memory_space<vmem>>, vector<8x128xf32>,
    return
  }
  func.func @transform_0(%arg0: i32) -> (i32, i32) {
    %c0_i32 = arith.constant 0 : i32
    %c0_i32_0 = arith.constant 0 : i32
    return %arg0, %c0_i32 : i32, i32
  }
  func.func @transform_1(%arg0: i32) -> (i32, i32, i32) {
    %c0_i32 = arith.constant 0 : i32
    %c0_i32_0 = arith.constant 0 : i32
    %c0_i32_1 = arith.constant 0 : i32
    return %arg0, %c0_i32, %c0_i32_0 : i32, i32, i32
  }
  func.func @transform_2(%arg0: i32) -> (i32, i32) {
    %c0_i32 = arith.constant 0 : i32
    %c0_i32_0 = arith.constant 0 : i32
    %c0_i32_1 = arith.constant 0 : i32
    return %c0_i32, %c0_i32_0 : i32, i32
  }
  func.func @transform_3(%arg0: i32) -> (i32, i32) {
    %c0_i32 = arith.constant 0 : i32
    %c0_i32_0 = arith.constant 0 : i32
    %c0_i32_1 = arith.constant 0 : i32
    return %c0_i32, %c0_i32_0 : i32, i32
  }
  func.func @transform_4(%arg0: i32) -> (i32, i32) {
    %c0_i32 = arith.constant 0 : i32
    %c0_i32_0 = arith.constant 0 : i32
    %c0_i32_1 = arith.constant 0 : i32
    return %c0_i32, %c0_i32_0 : i32, i32
  }
  func.func @transform_5(%arg0: i32) -> (i32, i32) {
    %c0_i32 = arith.constant 0 : i32
    %c0_i32_0 = arith.constant 0 : i32
    %c0_i32_1 = arith.constant 0 : i32
    return %c0_i32, %c0_i32_0 : i32, i32
  }
  func.func @transform_6(%arg0: i32) -> (i32, i32) {
    %c0_i32 = arith.constant 0 : i32
    %c0_i32_0 = arith.constant 0 : i32
    %c0_i32_1 = arith.constant 0 : i32
    return %c0_i32, %c0_i32_0 : i32, i32
  }
  func.func @transform_7(%arg0: i32) -> (i32, i32) {
    %c0_i32 = arith.constant 0 : i32
    %c0_i32_0 = arith.constant 0 : i32
    %c0_i32_1 = arith.constant 0 : i32
    return %c0_i32, %c0_i32_0 : i32, i32
  }
  func.func @transform_8(%arg0: i32) -> (i32, i32) {
    %c0_i32 = arith.constant 0 : i32
    %c0_i32_0 = arith.constant 0 : i32
    return %arg0, %c0_i32 : i32, i32
  }
}

</mosaic_0001>

<bundles_post_ra>
// kernel: _attention_impl.1
= control target key start
LH: loop header
LB: loop body
LE: loop exit
PB: predicated region body
PF: predicated region fallthrough
CT: control target
= control target key end

     0   :  { %13 = vsyncpa [#allocation3], 0  ;;  %s2110_s0 = inlined_call_operand.vmem [shape: f32[16,128], index: 0, kind: input, shape index: {}]   ;;  %s2111_s1 = inlined_call_operand.vmem [shape: f32[16,16,128], index: 1, kind: input, shape index: {}]   ;;  %s2112_s2 = inlined_call_operand.vmem [shape: f32[128,128], index: 2, kind: input, shape index: {}]   ;;  %s2113_s3 = inlined_call_operand.vmem [shape: f32[1,128], index: 3, kind: input, shape index: {}]   ;;  %s2114_s4 = inlined_call_operand.vmem [shape: f32[128,128], index: 4, kind: input, shape index: {}]   ;;  %s2115_s5 = inlined_call_operand.vmem [shape: f32[1,128], index: 5, kind: input, shape index: {}]   ;;  %s2116_s6 = inlined_call_operand.vmem [shape: f32[128,128], index: 6, kind: input, shape index: {}]   ;;  %s2117_s7 = inlined_call_operand.vmem [shape: f32[1,128], index: 7, kind: input, shape index: {}]   ;;  %s2118_s8 = inlined_call_operand.hbm [shape: f32[16,128], index: 8, kind: output, shape index: {}]  }
   0x1   :  { %15 = vsyncpa [#allocation3 + $0x1], 0  ;;  %s1664_s27 = smov 0   ;;  %s1666_s28 = smov 0  }
   0x2   :  { %s1668_s29 = smov 0   ;;  %s1670_s30 = smov 0  }
   0x3 LB: > { %s1685_s9 = sadd.s32 4294967295, %s1611_s30   ;;  %s1254_s10 = sadd.s32 4294967294, %s1611_s30   ;;  %s1611_s30 = sphi %s1670_s30, %s2124_s30   ;;  %s1607_s29 = sphi %s1668_s29, %s2123_s29   ;;  %s1603_s28 = sphi %s1666_s28, %s2122_s28   ;;  %s1599_s27 = sphi %s1664_s27, %s2121_s27  }
   0x4   : > { %s1689_s11 = sadd.s32 1, %s1611_s30   ;;  %s206_s12 = sadd.s32 1, %s1607_s29 }
   0x5   : > { %s203_s13 = ssub.s32 %s1611_s30, %s1689_s11  ;;  %p216_p0 = scmp.ne.s32.totalorder %s1607_s29, %s1603_s28 }
   0x6   : > { %p204_p1 = scmp.eq.s32.totalorder %s203_s13, 0  ;;  %p217_p2 = scmp.eq.s32.totalorder %s1685_s9, 1 }
   0x7   : > { %p222_p3 = scmp.ne.s32.totalorder %s1603_s28, %s1599_s27  ;;  %p223_p4 = scmp.eq.s32.totalorder %s1254_s10, 1 }
   0x8   : > { %s1700_s14 = scalar_select %p204_p1, %s1607_s29, %s206_s12  }
   0x9   : > { %p1702_p5 = por %p217_p2, %p216_p0  ;;  %p1706_p6 = por %p223_p4, %p222_p3 }
   0xa   : > { %p1257_p7 = scmp.ge.s32.totalorder %s1611_s30, 1  ;;  %p276_p8 = scmp.lt.s32.totalorder %s1611_s30, 3 }
   0xc   : > { %p277_p9 = pnand %p1257_p7, %p276_p8 }
   0xd   : > { %v343_v0 = vld [vmem:[%s2112_s2] sm:$0xff] (!%p277_p9)  ;;  %v344_v1 = vld [vmem:[%s2112_s2 + $0x8] sm:$0xff] (!%p277_p9)  ;;  %v345_v2 = vld [vmem:[%s2112_s2 + $0x10] sm:$0xff] (!%p277_p9)  ;;  %v1613_v3 = vmov (!%p277_p9), 0.0|0.0   ;;  %vm1614_vm0 = vmmov (!%p277_p9), 0   ;;  %v1615_v6 = vmov (!%p277_p9), 0.0   ;;  %v537_v59 = vlaneseq (!%p277_p9) }
   0xe   : > { %280 = sbr.rel (%p277_p9) target bundleno = 1512 (0x5e8), region = 52  ;;  %1427 = vmatprep.subr.bf16.mxu0 (!%p277_p9), %v1613_v3  ;;  %v1428_v4 = vpack.c.bf16 (!%p277_p9), %v344_v1, %v343_v0  ;;  %v346_v5 = vld [vmem:[%s2112_s2 + $0x18] sm:$0xff] (!%p277_p9)  ;;  %1354 = vmatprep.mubr.msk.f32.mxu0 (!%p277_p9), %vm1614_vm0, %v1615_v6  ;;  %v347_v8 = vld [vmem:[%s2112_s2 + $0x20] sm:$0xff] (!%p277_p9)  ;;  %v348_v9 = vld [vmem:[%s2112_s2 + $0x28] sm:$0xff] (!%p277_p9)  ;;  %p315_p10 = scmp.lt.s32.totalorder (!%p277_p9), %s1685_s9, 1  ;;  %vm803_vm1 = vcmask (!%p277_p9), 130112  }
   0xf   : > { %1451 = vmatprep.subr.bf16.mxu1 (!%p277_p9), %v1613_v3  ;;  %1389 = vmatprep.mubr.msk.f32.mxu1 (!%p277_p9), %vm1614_vm0, %v1615_v6  ;;  %v1431_v7 = vpack.c.bf16 (!%p277_p9), %v346_v5, %v345_v2  ;;  %v436_v10 = vld [vmem:[%s2114_s4] sm:$0xff] (!%p277_p9)  ;;  %v437_v11 = vld [vmem:[%s2114_s4 + $0x8] sm:$0xff] (!%p277_p9)  ;;  %v438_v13 = vld [vmem:[%s2114_s4 + $0x10] sm:$0xff] (!%p277_p9)  ;;  %v1434_v15 = vpack.c.bf16 (!%p277_p9), %v348_v9, %v347_v8  ;;  %s1260_s25 = sshll.u32 (!%p277_p9), %s1685_s9, 3  ;;  %v1616_v57 = vmov (!%p277_p9), 1966171168  }
  0x10   : > { %1429 = vmatpush3.bf16.msra.mxu0 (!%p277_p9), %v1428_v4  ;;  %v1452_v12 = vpack.c.bf16 (!%p277_p9), %v437_v11, %v436_v10  ;;  %v439_v14 = vld [vmem:[%s2114_s4 + $0x18] sm:$0xff] (!%p277_p9)  ;;  %v349_v16 = vld [vmem:[%s2112_s2 + $0x30] sm:$0xff] (!%p277_p9)  ;;  %v440_v19 = vld [vmem:[%s2114_s4 + $0x20] sm:$0xff] (!%p277_p9)  ;;  %v535_v58 = vunpack.c.l.s4 (!%p277_p9), %v1616_v57  ;;  %p320_p11 = scmp.lt.s32.totalorder (!%p277_p9), %s1260_s25, 15  ;;  %v1844_v61 = vshrl.u32 (!%p277_p9), %v537_v59, 7  ;;  %vm868_vm2 = vcmask (!%p277_p9), 1041409  }
  0x11   : > { %1430 = vmatprep.subr.bf16.mxu0 (!%p277_p9), %v1613_v3  ;;  %v350_v17 = vld [vmem:[%s2112_s2 + $0x38] sm:$0xff] (!%p277_p9)  ;;  %v1455_v18 = vpack.c.bf16 (!%p277_p9), %v439_v14, %v438_v13  ;;  %v441_v20 = vld [vmem:[%s2114_s4 + $0x28] sm:$0xff] (!%p277_p9)  ;;  %v351_v22 = vld [vmem:[%s2112_s2 + $0x40] sm:$0xff] (!%p277_p9)  ;;  %vm870_vm3 = vcmask (!%p277_p9), 1042434   ;;  %vm872_vm4 = vcmask (!%p277_p9), 1043459   ;;  %vm874_vm5 = vcmask (!%p277_p9), 1044484  }
  0x12   : > { %1453 = vmatpush3.bf16.msra.mxu1 (!%p277_p9), %v1452_v12  ;;  %v1437_v21 = vpack.c.bf16 (!%p277_p9), %v350_v17, %v349_v16  ;;  %v352_v23 = vld [vmem:[%s2112_s2 + $0x48] sm:$0xff] (!%p277_p9)  ;;  %v1458_v24 = vpack.c.bf16 (!%p277_p9), %v441_v20, %v440_v19  ;;  %v442_v25 = vld [vmem:[%s2114_s4 + $0x30] sm:$0xff] (!%p277_p9)  ;;  %v443_v26 = vld [vmem:[%s2114_s4 + $0x38] sm:$0xff] (!%p277_p9)  ;;  %v536_v60 = vunpack.c.0.s8 (!%p277_p9), %v535_v58  ;;  %vm876_vm6 = vcmask (!%p277_p9), 1045509   ;;  %s312_s23 = sand.u32 (!%p277_p9), 1, %s1603_s28   ;;  %s1267_s12 = sshll.u32 (!%p277_p9), %s1685_s9, 7 }
  0x13   : > { %1454 = vmatprep.subr.bf16.mxu1 (!%p277_p9), %v1613_v3  ;;  %v1440_v27 = vpack.c.bf16 (!%p277_p9), %v352_v23, %v351_v22  ;;  %v353_v28 = vld [vmem:[%s2112_s2 + $0x50] sm:$0xff] (!%p277_p9)  ;;  %v354_v29 = vld [vmem:[%s2112_s2 + $0x58] sm:$0xff] (!%p277_p9)  ;;  %v1461_v30 = vpack.c.bf16 (!%p277_p9), %v443_v26, %v442_v25  ;;  %v444_v31 = vld [vmem:[%s2114_s4 + $0x40] sm:$0xff] (!%p277_p9)  ;;  %vm878_vm7 = vcmask (!%p277_p9), 1046534   ;;  %vm880_vm8 = vcmask (!%p277_p9), 1047559   ;;  %s1258_s24 = sshll.u32 (!%p277_p9), %s312_s23, 3  ;;  %s2068_s19 = scalar_lea.hbm (!%p277_p9), %s2118_s8, %s1267_s12 }
  0x14   : > { %1432 = vmatpush3.bf16.msra.mxu0 (!%p277_p9), %v1431_v7  ;;  %v445_v32 = vld [vmem:[%s2114_s4 + $0x48] sm:$0xff] (!%p277_p9)  ;;  %v1443_v33 = vpack.c.bf16 (!%p277_p9), %v354_v29, %v353_v28  ;;  %v355_v34 = vld [vmem:[%s2112_s2 + $0x60] sm:$0xff] (!%p277_p9)  ;;  %v446_v37 = vld [vmem:[%s2114_s4 + $0x50] sm:$0xff] (!%p277_p9)  ;;  %v539_v62 = vsub.s32 (!%p277_p9), %v536_v60, %v1844_v61  ;;  %v677_v60 = vsub.s32 (!%p277_p9), 1, %v1844_v61  ;;  %vm884_vm10 = vcmask (!%p277_p9), 130048   ;;  %s314_s13 = scalar_lea.vmem (!%p277_p9), [#allocation2], %s1258_s24 }
  0x15   : > { %1433 = vmatprep.subr.bf16.mxu0 %v1613_v3  ;;  %v356_v35 = vld [vmem:[%s2112_s2 + $0x68] sm:$0xff]  ;;  %v1464_v36 = vpack.c.bf16 %v445_v32, %v444_v31  ;;  %s316_s26 = scalar_select %p315_p10, %s1685_s9, 1  ;;  %v447_v38 = vld [vmem:[%s2114_s4 + $0x58] sm:$0xff]  ;;  %v357_v40 = vld [vmem:[%s2112_s2 + $0x70] sm:$0xff] }
  0x16   : > { %1456 = vmatpush3.bf16.msra.mxu1 %v1455_v18  ;;  %v1446_v39 = vpack.c.bf16 %v356_v35, %v355_v34  ;;  %v358_v41 = vld [vmem:[%s2112_s2 + $0x78] sm:$0xff]  ;;  %v1467_v42 = vpack.c.bf16 %v447_v38, %v446_v37  ;;  %v448_v43 = vld [vmem:[%s2114_s4 + $0x60] sm:$0xff]  ;;  %v449_v44 = vld [vmem:[%s2114_s4 + $0x68] sm:$0xff]  ;;  %s2126_s25 = smov (!%p320_p11, %s1260_s25), 15  ;;  %s1170_s20 = scalar_lea.sflag [#allocation3], %s312_s23 }
  0x17   : > { %1457 = vmatprep.subr.bf16.mxu1 %v1613_v3  ;;  %s1259_s22 = sshll.u32 %s316_s26, 3  ;;  %v1449_v45 = vpack.c.bf16 %v358_v41, %v357_v40  ;;  %v1470_v46 = vpack.c.bf16 %v449_v44, %v448_v43  ;;  %v450_v48 = vld [vmem:[%s2114_s4 + $0x70] sm:$0xff]  ;;  %v451_v49 = vld [vmem:[%s2114_s4 + $0x78] sm:$0xff]  ;;  %v1263_v51 = vld [vmem:[%s2113_s3] ss:$0 sm:$0xff]  ;;  %s1270_s10 = sshll.u32 %s2126_s25, 4 }
  0x18   : > { %1435 = vmatpush3.bf16.msra.mxu0 %v1434_v15  ;;  %s318_s17 = scalar_lea.vmem %s2110_s0, %s1259_s22  ;;  %v1473_v50 = vpack.c.bf16 %v451_v49, %v450_v48  ;;  %v1264_v53 = vld [vmem:[%s2115_s5] ss:$0 sm:$0xff]  ;;  %v1617_v43 = vmov 0   ;;  %s1618_s9 = smov [#allocation2]  }
  0x19   : > { %1436 = vmatprep.subr.bf16.mxu0 %v1613_v3  ;;  %v326_v47 = vld [vmem:[%s318_s17] sm:$0xff]  ;;  %s1850_s17 = scalar_lea.vmem %s2111_s1, %s1270_s10  ;;  %1544 = vset.pattern.permute.xlu0 %v1617_v43  ;;  %s1553_s22 = sshll.u32 %s1618_s9, 4  ;;  %s1554_s22 = int_to_ptr.vmem [resolvable:$false] %s1553_s22 }
  0x1a   : > { %1459 = vmatpush3.bf16.msra.mxu1 %v1458_v24  ;;  %v1856_v7 = vld [vmem:[%s1850_s17 + $0x8] sm:$0xff]  ;;  %v1859_v8 = vld [vmem:[%s1850_s17] sm:$0xff]  ;;  %v1866_v16 = vld [vmem:[%s1850_s17 + $0x18] sm:$0xff]  ;;  %1543 = vset.pattern.permute.xlu1 %v1617_v43  ;;  %s1555_s24 = scalar_lea.vmem %s1554_s22, 256 }
  0x1b   : > { %1460 = vmatprep.subr.bf16.mxu1 %v1613_v3  ;;  %v1869_v17 = vld [vmem:[%s1850_s17 + $0x10] sm:$0xff]  ;;  %v1875_v22 = vld [vmem:[%s1850_s17 + $0x28] sm:$0xff]  ;;  %v1878_v23 = vld [vmem:[%s1850_s17 + $0x20] sm:$0xff] }
  0x1c   : > { %1438 = vmatpush3.bf16.msra.mxu0 %v1437_v21  ;;  %v1884_v29 = vld [vmem:[%s1850_s17 + $0x48] sm:$0xff]  ;;  %v1893_v35 = vld [vmem:[%s1850_s17 + $0x38] sm:$0xff]  ;;  %v1914_v49 = vld [vmem:[%s1850_s17 + $0x60] sm:$0xff] }
  0x1d   : > { %1439 = vmatprep.subr.bf16.mxu0 %v1613_v3  ;;  %v1902_v41 = vld [vmem:[%s1850_s17 + $0x58] sm:$0xff]  ;;  %v1911_v48 = vld [vmem:[%s1850_s17 + $0x68] sm:$0xff] }
  0x1e   : > { %1462 = vmatpush3.bf16.msra.mxu1 %v1461_v30  ;;  %v1887_v30 = vld [vmem:[%s1850_s17 + $0x40] sm:$0xff] }
  0x1f   : > { %1463 = vmatprep.subr.bf16.mxu1 %v1613_v3 }
  0x20   : > { %1441 = vmatpush3.bf16.msra.mxu0 %v1440_v27 }
  0x21   : > { %1442 = vmatprep.subr.bf16.mxu0 %v1613_v3 }
  0x22   : > { %1465 = vmatpush3.bf16.msra.mxu1 %v1464_v36  ;;  %v1896_v36 = vld [vmem:[%s1850_s17 + $0x30] sm:$0xff] }
  0x23   : > { %1466 = vmatprep.subr.bf16.mxu1 %v1613_v3 }
  0x24   : > { %1444 = vmatpush3.bf16.msra.mxu0 %v1443_v33 }
  0x25   : > { %1445 = vmatprep.subr.bf16.mxu0 %v1613_v3 }
  0x26   : > { %1468 = vmatpush3.bf16.msra.mxu1 %v1467_v42  ;;  %v1905_v42 = vld [vmem:[%s1850_s17 + $0x50] sm:$0xff] }
  0x27   : > { %1469 = vmatprep.subr.bf16.mxu1 %v1613_v3 }
  0x28   : > { %1447 = vmatpush3.bf16.msra.mxu0 %v1446_v39 }
  0x29   : > { %1448 = vmatprep.subr.bf16.mxu0 %v1613_v3 }
  0x2a   : > { %1471 = vmatpush3.bf16.msra.mxu1 %v1470_v46 }
  0x2b   : > { %1472 = vmatprep.subr.bf16.mxu1 %v1613_v3 }
  0x2c   : > { %1450 = vmatpush3.bf16.msra.mxu0 %v1449_v45 }
  0x2d   : > { %1475 = vmatprep.subr.bf16.mxu0 %v1613_v3 }
  0x2e   : > { %1474 = vmatpush3.bf16.msra.mxu1 %v1473_v50 }
  0x2f   : > { %1355 = vmatmul.mubr.f32.vlgmr.msra.gmra.mrb[0].mxu0 %v326_v47 }
  0x30   : > { %1424 = vmatprep.mubr.msk.f32.mxu0 %vm1614_vm0, %v1615_v6  ;;  %v1853_v6 = vsub.s32 0, %v1844_v61 }
 0x102   : > { %v432_v52 = vpop.f32.mrb[0].mxu0 }
 0x103   : > { %v433_v54 = vadd.f32 %v1263_v51, %v432_v52  ;;  %v1356_v55 = vpop.f32.mrb[1].mxu0 }
 0x105   : > { %1390 = vmatmul.mubr.f32.vlgmr.msra.gmra.mrb[0].mxu1 %v433_v54  ;;  %v529_v56 = vmul.f32 %v1264_v53, %v433_v54  ;;  %v1920_v53 = vld [vmem:[%s1850_s17 + $0x78] sm:$0xff]  ;;  %v1923_v54 = vld [vmem:[%s1850_s17 + $0x70] sm:$0xff]  ;;  %s1183_s17 = sshll.u32 %s314_s13, 4  ;;  %s2070_s17 = int_to_ptr.vmem [resolvable:$true] %s1183_s17 }
 0x106   : > { %s1549_s21 = scalar_lea.vmem %s2070_s17, 128  ;;  %p1556_p1 = scmp.lt.s32.totalorder %s2070_s17, %s1554_s22 }
 0x107   : > { %530 = vadd.xlane.f32.xlu0 %v529_v56  ;;  %p1550_p12 = scmp.ne.s32.totalorder %s2070_s17, %s1549_s21  ;;  %p1557_p2 = scmp.lt.s32.totalorder %s1555_s24, %s1549_s21 }
 0x109   : > { %p1551_p13 = pnand %p1550_p12, %p1702_p5  ;;  %p1558_p3 = por %p1557_p2, %p1556_p1 }
 0x10b   : > { %p1552_p0 = pneg %p1551_p13 }
 0x10d   : > { %p1559_p4 = pnand %p1558_p3, %p1552_p0 }
 0x194   : > { %v531_v57 = vpop.xlane.xlu0 %530 }
 0x195   : > { %v674_v58 = vrot.slane %v531_v57, %v1853_v6 }
 0x1d8   : > { %v518_v63 = vpop.f32.mrb[0].mxu1 }
 0x1d9   : > { %v540_v0 = vrot.slane %v518_v63, %v539_v62  ;;  %v1391_v1 = vpop.f32.mrb[1].mxu1  ;;  %v533_v2 = vcombine.high %v518_v63, %v518_v63 }
 0x1db   : > { %v548_v4 = vcombine.high %v540_v0, %v540_v0  ;;  %v556_v5 = vrot.slane %v540_v0, %v539_v62  ;;  %v547_v11 = vrot.slane %v533_v2, %v539_v62  ;;  %v678_v2 = vrot.slane %v531_v57, %v677_v60 }
 0x1dd   : > { %v585_v9 = vrot.slane %v556_v5, %v1853_v6  ;;  %v570_v10 = vrot.slane %v548_v4, %v539_v62  ;;  %v578_v15 = vcombine.high %v556_v5, %v556_v5  ;;  %v563_v21 = vrot.slane %v547_v11, %v539_v62 }
 0x1de   : > { %v549_v24 = vcombine.high %v547_v11, %v547_v11 }
 0x1df   : > { %v623_v12 = vmul.f32 %v585_v9, %v1856_v7  ;;  %v622_v13 = vmul.f32 %v585_v9, %v1859_v8  ;;  %v589_v14 = vrot.slane %v570_v10, %v1853_v6  ;;  %v593_v20 = vrot.slane %v578_v15, %v1853_v6 }
 0x1e0   : > { %v601_v27 = vrot.slane %v563_v21, %v1853_v6  ;;  %v580_v28 = vcombine.high %v570_v10, %v570_v10  ;;  %v577_v34 = vrot.slane %v549_v24, %v539_v62  ;;  %v579_v37 = vcombine.high %v563_v21, %v563_v21 }
 0x1e1   : > { %640 = vadd.xlane.f32.xlu1 %v623_v12  ;;  %638 = vadd.xlane.f32.xlu0 %v622_v13  ;;  %v625_v18 = vmul.f32 %v589_v14, %v1866_v16  ;;  %v624_v19 = vmul.f32 %v589_v14, %v1869_v17  ;;  %v627_v25 = vmul.f32 %v593_v20, %v1875_v22  ;;  %v681_v10 = vsub.s32 2, %v1844_v61 }
 0x1e2   : > { %v626_v26 = vmul.f32 %v593_v20, %v1878_v23  ;;  %v631_v31 = vmul.f32 %v601_v27, %v1884_v29  ;;  %v630_v32 = vmul.f32 %v601_v27, %v1887_v30  ;;  %v597_v33 = vrot.slane %v580_v28, %v1853_v6 }
 0x1e3   : > { %v605_v40 = vrot.slane %v577_v34, %v1853_v6  ;;  %v609_v46 = vrot.slane %v579_v37, %v1853_v6  ;;  %v581_v47 = vcombine.high %v577_v34, %v577_v34  ;;  %v682_v13 = vrot.slane %v531_v57, %v681_v10 }
 0x1e4   : > { %v629_v38 = vmul.f32 %v597_v33, %v1893_v35  ;;  %v628_v39 = vmul.f32 %v597_v33, %v1896_v36  ;;  %v693_v20 = vsub.s32 5, %v1844_v61  ;;  %v697_v28 = vsub.s32 6, %v1844_v61 }
 0x1e5   : > { %644 = vadd.xlane.f32.xlu0 %v625_v18  ;;  %642 = vadd.xlane.f32.xlu1 %v624_v19  ;;  %v633_v44 = vmul.f32 %v605_v40, %v1902_v41  ;;  %v632_v45 = vmul.f32 %v605_v40, %v1905_v42  ;;  %v635_v50 = vmul.f32 %v609_v46, %v1911_v48  ;;  %v689_v19 = vsub.s32 4, %v1844_v61 }
 0x1e6   : > { %v634_v51 = vmul.f32 %v609_v46, %v1914_v49  ;;  %v613_v52 = vrot.slane %v581_v47, %v1853_v6  ;;  %v694_v27 = vrot.slane %v531_v57, %v693_v20  ;;  %v685_v34 = vsub.s32 3, %v1844_v61 }
 0x1e7   : > { %v698_v37 = vrot.slane %v531_v57, %v697_v28 }
 0x1e8   : > { %v637_v55 = vmul.f32 %v613_v52, %v1920_v53  ;;  %v636_v56 = vmul.f32 %v613_v52, %v1923_v54 }
 0x1e9   : > { %648 = vadd.xlane.f32.xlu0 %v627_v25  ;;  %646 = vadd.xlane.f32.xlu1 %v626_v26  ;;  %v690_v26 = vrot.slane %v531_v57, %v689_v19 }
 0x1ed   : > { %656 = vadd.xlane.f32.xlu0 %v631_v31  ;;  %654 = vadd.xlane.f32.xlu1 %v630_v32 }
 0x1f1   : > { %652 = vadd.xlane.f32.xlu0 %v629_v38  ;;  %650 = vadd.xlane.f32.xlu1 %v628_v39  ;;  %v701_v38 = vsub.s32 7, %v1844_v61 }
 0x1f3   : > { %v702_v46 = vrot.slane %v531_v57, %v701_v38 }
 0x1f5   : > { %660 = vadd.xlane.f32.xlu0 %v633_v44  ;;  %658 = vadd.xlane.f32.xlu1 %v632_v45  ;;  %v686_v45 = vrot.slane %v531_v57, %v685_v34 }
 0x1f9   : > { %664 = vadd.xlane.f32.xlu0 %v635_v50  ;;  %662 = vadd.xlane.f32.xlu1 %v634_v51 }
 0x1fd   : > { %668 = vadd.xlane.f32.xlu0 %v637_v55  ;;  %666 = vadd.xlane.f32.xlu1 %v636_v56 }
 0x26e   : > { %v641_v62 = vpop.xlane.xlu1 %640  ;;  %v639_v63 = vpop.xlane.xlu0 %638 }
 0x26f   : > { %v712_v0 = vadd.f32 %v674_v58, %v641_v62  ;;  %v711_v1 = vadd.f32 %v674_v58, %v639_v63 }
 0x271   : > { %750 = vperm.xlu0 %1544, %v712_v0   ;;  %747 = vperm.xlu1 %1543, %v711_v1  }
 0x272   : > { %v643_v4 = vpop.xlane.xlu1 %642  ;;  %v645_v9 = vpop.xlane.xlu0 %644 }
 0x273   : > { %v713_v5 = vadd.f32 %v678_v2, %v643_v4  ;;  %v714_v12 = vadd.f32 %v678_v2, %v645_v9 }
 0x275   : > { %753 = vperm.xlu1 %1543, %v713_v5  }
 0x276   : > { %v647_v11 = vpop.xlane.xlu1 %646  ;;  %v649_v14 = vpop.xlane.xlu0 %648 }
 0x277   : > { %v715_v18 = vadd.f32 %v682_v13, %v647_v11  ;;  %v716_v24 = vadd.f32 %v682_v13, %v649_v14  ;;  %v728_v11 = vand.u32 127, %v537_v59 }
 0x279   : > { %756 = vperm.xlu1 %1543, %v714_v12   ;;  %v798_v14 = vadd.s32 4294967288, %v728_v11  ;;  %vm729_vm9 = vcmp.lt.s32.totalorder %v728_v11, 10 }
 0x27a   : > { %v655_v15 = vpop.xlane.xlu1 %654  ;;  %v657_v25 = vpop.xlane.xlu0 %656 }
 0x27b   : > { %v719_v32 = vadd.f32 %v690_v26, %v655_v15  ;;  %v720_v43 = vadd.f32 %v690_v26, %v657_v25 }
 0x27d   : > { %759 = vperm.xlu1 %1543, %v715_v18  }
 0x27e   : > { %v651_v21 = vpop.xlane.xlu1 %650  ;;  %v653_v39 = vpop.xlane.xlu0 %652 }
 0x27f   : > { %v717_v50 = vadd.f32 %v686_v45, %v651_v21  ;;  %v718_v55 = vadd.f32 %v686_v45, %v653_v39  ;;  %v801_v21 = vsub.s32 %v798_v14, %v1844_v61 }
 0x281   : > { %762 = vperm.xlu1 %1543, %v716_v24   ;;  %v796_v24 = vsub.s32 %v728_v11, %v1844_v61 }
 0x282   : > { %v659_v31 = vpop.xlane.xlu1 %658  ;;  %v661_v52 = vpop.xlane.xlu0 %660 }
 0x283   : > { %v721_v33 = vadd.f32 %v694_v27, %v659_v31  ;;  %v722_v58 = vadd.f32 %v694_v27, %v661_v52 }
 0x285   : > { %777 = vperm.xlu0 %1544, %v721_v33   ;;  %771 = vperm.xlu1 %1543, %v719_v32  }
 0x286   : > { %v663_v40 = vpop.xlane.xlu1 %662  ;;  %v665_v56 = vpop.xlane.xlu0 %664 }
 0x287   : > { %v723_v44 = vadd.f32 %v698_v37, %v663_v40  ;;  %v724_v62 = vadd.f32 %v698_v37, %v665_v56 }
 0x289   : > { %783 = vperm.xlu0 %1544, %v723_v44   ;;  %774 = vperm.xlu1 %1543, %v720_v43  }
 0x28a   : > { %v667_v47 = vpop.xlane.xlu1 %666  ;;  %v669_v63 = vpop.xlane.xlu0 %668 }
 0x28b   : > { %v725_v51 = vadd.f32 %v702_v46, %v667_v47  ;;  %v726_v0 = vadd.f32 %v702_v46, %v669_v63 }
 0x28d   : > { %765 = vperm.xlu1 %1543, %v717_v50   ;;  %789 = vperm.xlu0 %1544, %v725_v51  }
 0x291   : > { %768 = vperm.xlu1 %1543, %v718_v55  }
 0x295   : > { %780 = vperm.xlu1 %1543, %v722_v58  }
 0x299   : > { %786 = vperm.xlu1 %1543, %v724_v62  }
 0x29d   : > { %792 = vperm.xlu1 %1543, %v726_v0  }
 0x2f0   : > { %v748_v1 = vpop.permute.xlu1 %747  ;;  %v751_v13 = vpop.permute.xlu0 %750 }
 0x2f1   : > { %v802_v31 = vrot.slane %v751_v13, %v801_v21  ;;  %v797_v32 = vrot.slane %v748_v1, %v796_v24 }
 0x2f3   : > { %v804_v46 = vsel %vm803_vm1, %v802_v31, %v797_v32 }
 0x2f4   : > { %v754_v2 = vpop.permute.xlu1 %753 }
 0x2f5   : > { %v808_v33 = vrot.slane %v754_v2, %v796_v24 }
 0x2f8   : > { %v757_v4 = vpop.permute.xlu1 %756 }
 0x2f9   : > { %v812_v26 = vrot.slane %v757_v4, %v801_v21 }
 0x2fb   : > { %v813_v43 = vsel %vm803_vm1, %v812_v26, %v808_v33 }
 0x2fc   : > { %v760_v57 = vpop.permute.xlu1 %759  ;;  %v869_v51 = vsel %vm868_vm2, %v813_v43, %v804_v46  ;;  %v1059_v46 = vld [vmem:[%s2116_s6] sm:$0xff] }
 0x2fd   : > { %v817_v39 = vrot.slane %v760_v57, %v796_v24 }
 0x300   : > { %v763_v5 = vpop.permute.xlu1 %762 }
 0x301   : > { %v821_v27 = vrot.slane %v763_v5, %v801_v21 }
 0x303   : > { %v822_v45 = vsel %vm803_vm1, %v821_v27, %v817_v39 }
 0x304   : > { %v772_v9 = vpop.permute.xlu1 %771  ;;  %v778_v18 = vpop.permute.xlu0 %777  ;;  %v871_v56 = vsel %vm870_vm3, %v822_v45, %v869_v51 }
 0x305   : > { %v844_v58 = vrot.slane %v778_v18, %v796_v24  ;;  %v835_v63 = vrot.slane %v772_v9, %v796_v24 }
 0x308   : > { %v775_v12 = vpop.permute.xlu1 %774  ;;  %v784_v40 = vpop.permute.xlu0 %783 }
 0x309   : > { %v839_v52 = vrot.slane %v775_v12, %v801_v21  ;;  %v853_v0 = vrot.slane %v784_v40, %v796_v24 }
 0x30b   : > { %v840_v57 = vsel %vm803_vm1, %v839_v52, %v835_v63  ;;  %v1062_v52 = vld [vmem:[%s2116_s6 + $0x18] sm:$0xff]  ;;  %v1065_v63 = vld [vmem:[%s2116_s6 + $0x30] sm:$0xff] }
 0x30c   : > { %v766_v15 = vpop.permute.xlu1 %765  ;;  %v790_v1 = vpop.permute.xlu0 %789 }
 0x30d   : > { %v826_v44 = vrot.slane %v766_v15, %v796_v24  ;;  %v862_v12 = vrot.slane %v790_v1, %v796_v24 }
 0x310   : > { %v769_v25 = vpop.permute.xlu1 %768 }
 0x311   : > { %v830_v37 = vrot.slane %v769_v25, %v801_v21 }
 0x313   : > { %v831_v47 = vsel %vm803_vm1, %v830_v37, %v826_v44 }
 0x314   : > { %v781_v59 = vpop.permute.xlu1 %780  ;;  %v873_v2 = vsel %vm872_vm4, %v831_v47, %v871_v56  ;;  %v1060_v47 = vld [vmem:[%s2116_s6 + $0x8] sm:$0xff] }
 0x315   : > { %v848_v50 = vrot.slane %v781_v59, %v801_v21  ;;  %v875_v15 = vsel %vm874_vm5, %v840_v57, %v873_v2  ;;  %v1476_v51 = vpack.c.bf16 %v1060_v47, %v1059_v46  ;;  %v1067_v2 = vld [vmem:[%s2116_s6 + $0x40] sm:$0xff] }
 0x317   : > { %v849_v4 = vsel %vm803_vm1, %v848_v50, %v844_v58  ;;  %1477 = vmatpush3.bf16.msra.mxu0 %v1476_v51  ;;  %v1064_v58 = vld [vmem:[%s2116_s6 + $0x28] sm:$0xff] }
 0x318   : > { %v787_v55 = vpop.permute.xlu1 %786  ;;  %v877_v9 = vsel %vm876_vm6, %v849_v4, %v875_v15  ;;  %1478 = vmatprep.subr.bf16.mxu0 %v1613_v3  ;;  %v1068_v4 = vld [vmem:[%s2116_s6 + $0x48] sm:$0xff] }
 0x319   : > { %v857_v62 = vrot.slane %v787_v55, %v801_v21  ;;  %v1072_v15 = vld [vmem:[%s2116_s6 + $0x68] sm:$0xff] }
 0x31b   : > { %v858_v5 = vsel %vm803_vm1, %v857_v62, %v853_v0  ;;  %v1066_v0 = vld [vmem:[%s2116_s6 + $0x38] sm:$0xff] }
 0x31c   : > { %v793_v13 = vpop.permute.xlu1 %792  ;;  %v879_v25 = vsel %vm878_vm7, %v858_v5, %v877_v9  ;;  %v1069_v5 = vld [vmem:[%s2116_s6 + $0x50] sm:$0xff] }
 0x31d   : > { %v866_v14 = vrot.slane %v793_v13, %v801_v21  ;;  %v1070_v13 = vld [vmem:[%s2116_s6 + $0x58] sm:$0xff] }
 0x31f   : > { %v867_v18 = vsel %vm803_vm1, %v866_v14, %v862_v12  ;;  %v1071_v14 = vld [vmem:[%s2116_s6 + $0x60] sm:$0xff] }
 0x320   : > { %v881_v26 = vsel %vm880_vm8, %v867_v18, %v879_v25  ;;  %v1073_v18 = vld [vmem:[%s2116_s6 + $0x70] sm:$0xff]  ;;  %v1074_v25 = vld [vmem:[%s2116_s6 + $0x78] sm:$0xff] }
 0x321   : > { %v883_v27 = vsel %vm729_vm9, %v881_v26, -1e+30  ;;  %v1497_v26 = vpack.c.bf16 %v1074_v25, %v1073_v18 }
 0x322   : > { %v885_v31 = vsel %vm884_vm10, %v883_v27, -inf }
 0x323   : > { %886 = vmax.xlane.f32.xlu0 %v885_v31 }
 0x3b0   : > { %v887_v32 = vpop.xlane.xlu0 %886 }
 0x3b1   : > { %v888_v33 = vsub.f32 %v883_v27, %v887_v32 }
 0x3b3   : > { %v889_v24 = vmul.f32 1.442695, %v888_v33 }
 0x3b5   : > { %1545 = vpow2.f32 %v889_v24 }
 0x3bf   : > { %v1546_v21 = vpop.eup %1545 }
 0x3c0   : > { %v891_v37 = vsel %vm884_vm10, %v1546_v21, 0.0 }
 0x3c1   : > { %892 = vadd.xlane.f32.xlu1 %v891_v37 }
 0x44e   : > { %v893_v11 = vpop.xlane.xlu1 %892 }
 0x44f   : > { %1547 = vrcp.f32 %v893_v11 }
 0x459   : > { %v1548_v39 = vpop.eup %1547 }
 0x45a   : > { %v895_v40 = vmul.f32 %v1548_v39, %v893_v11 }
 0x45c   : > { %v896_v59 = vsub.f32 2.0, %v895_v40 }
 0x45e   : > { %v897_v43 = vmul.f32 %v1548_v39, %v896_v59 }
 0x460   : > { %v898_v44 = vmul.f32 %v1546_v21, %v897_v43 }
 0x462   : > { %v902_v45 = vrot.slane %v898_v44, %v1853_v6  ;;  %v913_v50 = vrot.slane %v898_v44, %v677_v60  ;;  %v1061_v6 = vld [vmem:[%s2116_s6 + $0x10] sm:$0xff]  ;;  %v924_v55 = vrot.slane %v898_v44, %v681_v10  ;;  %v1063_v60 = vld [vmem:[%s2116_s6 + $0x20] sm:$0xff]  ;;  %v935_v62 = vrot.slane %v898_v44, %v685_v34 }
 0x463   : > { %v1479_v56 = vpack.c.bf16 %v1062_v52, %v1061_v6  ;;  %v1482_v10 = vpack.c.bf16 %v1064_v58, %v1063_v60  ;;  %v946_v1 = vrot.slane %v898_v44, %v689_v19  ;;  %v1485_v34 = vpack.c.bf16 %v1066_v0, %v1065_v63 }
 0x464   : > { %908 = vbcast.lane.b32.xlu1 %v902_v45, 264  ;;  %904 = vbcast.lane.b32.xlu0 %v902_v45, 256  ;;  %v957_v57 = vrot.slane %v898_v44, %v693_v20  ;;  %v1488_v19 = vpack.c.bf16 %v1068_v4, %v1067_v2  ;;  %v968_v12 = vrot.slane %v898_v44, %v697_v28 }
 0x465   : > { %1480 = vmatpush3.bf16.msra.mxu0 %v1479_v56  ;;  %v1491_v20 = vpack.c.bf16 %v1070_v13, %v1069_v5  ;;  %v979_v9 = vrot.slane %v898_v44, %v701_v38  ;;  %v1494_v28 = vpack.c.bf16 %v1072_v15, %v1071_v14 }
 0x466   : > { %1481 = vmatprep.subr.bf16.mxu0 %v1613_v3 }
 0x468   : > { %919 = vbcast.lane.b32.xlu1 %v913_v50, 264  ;;  %915 = vbcast.lane.b32.xlu0 %v913_v50, 256 }
 0x469   : > { %1483 = vmatpush3.bf16.msra.mxu0 %v1482_v10 }
 0x46a   : > { %1484 = vmatprep.subr.bf16.mxu0 %v1613_v3 }
 0x46c   : > { %930 = vbcast.lane.b32.xlu1 %v924_v55, 264  ;;  %926 = vbcast.lane.b32.xlu0 %v924_v55, 256 }
 0x46d   : > { %1486 = vmatpush3.bf16.msra.mxu0 %v1485_v34 }
 0x46e   : > { %1487 = vmatprep.subr.bf16.mxu0 %v1613_v3 }
 0x470   : > { %941 = vbcast.lane.b32.xlu1 %v935_v62, 264  ;;  %937 = vbcast.lane.b32.xlu0 %v935_v62, 256 }
 0x471   : > { %1489 = vmatpush3.bf16.msra.mxu0 %v1488_v19 }
 0x472   : > { %1490 = vmatprep.subr.bf16.mxu0 %v1613_v3 }
 0x474   : > { %952 = vbcast.lane.b32.xlu1 %v946_v1, 264  ;;  %948 = vbcast.lane.b32.xlu0 %v946_v1, 256 }
 0x475   : > { %1492 = vmatpush3.bf16.msra.mxu0 %v1491_v20 }
 0x476   : > { %1493 = vmatprep.subr.bf16.mxu0 %v1613_v3 }
 0x478   : > { %963 = vbcast.lane.b32.xlu1 %v957_v57, 264  ;;  %959 = vbcast.lane.b32.xlu0 %v957_v57, 256 }
 0x479   : > { %1495 = vmatpush3.bf16.msra.mxu0 %v1494_v28 }
 0x47a   : > { %1496 = vmatprep.subr.bf16.mxu0 %v1613_v3 }
 0x47c   : > { %974 = vbcast.lane.b32.xlu1 %v968_v12, 264  ;;  %970 = vbcast.lane.b32.xlu0 %v968_v12, 256 }
 0x47d   : > { %1498 = vmatpush3.bf16.msra.mxu0 %v1497_v26 }
 0x480   : > { %985 = vbcast.lane.b32.xlu1 %v979_v9, 264  ;;  %981 = vbcast.lane.b32.xlu0 %v979_v9, 256 }
 0x4d6   : > { %v909_v61 = vpop.permute.xlu1 %908  ;;  %v905_v38 = vpop.permute.xlu0 %904 }
 0x4d7   : > { %v988_v24 = vmul.f32 %v909_v61, %v1856_v7  ;;  %v987_v21 = vmul.f32 %v905_v38, %v1859_v8 }
 0x4d9   : > { %v1003_v59 = vadd.f32 %v988_v24, %v987_v21 }
 0x4da   : > { %v920_v27 = vpop.permute.xlu1 %919  ;;  %v916_v31 = vpop.permute.xlu0 %915 }
 0x4db   : > { %v990_v32 = vmul.f32 %v920_v27, %v1866_v16  ;;  %v989_v33 = vmul.f32 %v916_v31, %v1869_v17  ;;  %v1004_v47 = vrot.slane %v1003_v59, 4 }
 0x4dd   : > { %v1010_v3 = vadd.f32 %v990_v32, %v989_v33  ;;  %v1005_v56 = vadd.f32 %v1004_v47, %v1003_v59 }
 0x4de   : > { %v931_v37 = vpop.permute.xlu1 %930  ;;  %v927_v11 = vpop.permute.xlu0 %926 }
 0x4df   : > { %v992_v39 = vmul.f32 %v931_v37, %v1875_v22  ;;  %v991_v40 = vmul.f32 %v927_v11, %v1878_v23  ;;  %v1011_v17 = vrot.slane %v1010_v3, 4  ;;  %v1006_v34 = vrot.slane %v1005_v56, 2 }
 0x4e1   : > { %v1017_v43 = vadd.f32 %v992_v39, %v991_v40  ;;  %v1012_v52 = vadd.f32 %v1011_v17, %v1010_v3  ;;  %v1007_v15 = vadd.f32 %v1006_v34, %v1005_v56 }
 0x4e2   : > { %v942_v44 = vpop.permute.xlu1 %941  ;;  %v938_v45 = vpop.permute.xlu0 %937 }
 0x4e3   : > { %v994_v46 = vmul.f32 %v942_v44, %v1893_v35  ;;  %v993_v16 = vmul.f32 %v938_v45, %v1896_v36  ;;  %v1018_v7 = vrot.slane %v1017_v43, 4  ;;  %v1013_v0 = vrot.slane %v1012_v52, 2 }
 0x4e4   : > { %v1008_v24 = vrot.slane %v1007_v15, 1 }
 0x4e5   : > { %v1024_v50 = vadd.f32 %v994_v46, %v993_v16  ;;  %v1019_v60 = vadd.f32 %v1018_v7, %v1017_v43  ;;  %v1014_v20 = vadd.f32 %v1013_v0, %v1012_v52 }
 0x4e6   : > { %v953_v8 = vpop.permute.xlu1 %952  ;;  %v949_v51 = vpop.permute.xlu0 %948 }
 0x4e7   : > { %v996_v6 = vmul.f32 %v953_v8, %v1884_v29  ;;  %v995_v22 = vmul.f32 %v949_v51, %v1887_v30  ;;  %v1025_v23 = vrot.slane %v1024_v50, 4  ;;  %v1020_v2 = vrot.slane %v1019_v60, 2 }
 0x4e9   : > { %v1031_v55 = vadd.f32 %v996_v6, %v995_v22  ;;  %v1026_v35 = vadd.f32 %v1025_v23, %v1024_v50 }
 0x4ea   : > { %v964_v58 = vpop.permute.xlu1 %963  ;;  %v960_v62 = vpop.permute.xlu0 %959 }
 0x4eb   : > { %v1032_v10 = vrot.slane %v1031_v55, 4  ;;  %v998_v36 = vmul.f32 %v964_v58, %v1902_v41  ;;  %v997_v63 = vmul.f32 %v960_v62, %v1905_v42  ;;  %v1027_v57 = vrot.slane %v1026_v35, 2 }
 0x4ec   : > { %v1021_v41 = vadd.f32 %v1020_v2, %v1019_v60  ;;  %v1265_v60 = vld [vmem:[%s2117_s7] ss:$0 sm:$0xff] }
 0x4ed   : > { %v1033_v1 = vadd.f32 %v1032_v10, %v1031_v55  ;;  %v1038_v29 = vadd.f32 %v998_v36, %v997_v63  ;;  %v1028_v18 = vadd.f32 %v1027_v57, %v1026_v35 }
 0x4ee   : > { %v975_v4 = vpop.permute.xlu1 %974  ;;  %v971_v30 = vpop.permute.xlu0 %970  ;;  %v1022_v32 = vrot.slane %v1021_v41, 1 }
 0x4ef   : > { %v1000_v19 = vmul.f32 %v975_v4, %v1911_v48  ;;  %v999_v5 = vmul.f32 %v971_v30, %v1914_v49  ;;  %v1034_v13 = vrot.slane %v1033_v1, 2  ;;  %v1039_v12 = vrot.slane %v1038_v29, 4 }
 0x4f0   : > { %v1015_v48 = vrot.slane %v1014_v20, 1  ;;  %v1029_v21 = vrot.slane %v1028_v18, 1  ;;  %v1023_v44 = vadd.f32 %v1022_v32, %v1021_v41 }
 0x4f1   : > { %v1045_v14 = vadd.f32 %v1000_v19, %v999_v5  ;;  %v1040_v9 = vadd.f32 %v1039_v12, %v1038_v29  ;;  %v1035_v38 = vadd.f32 %v1034_v13, %v1033_v1 }
 0x4f2   : > { %v986_v42 = vpop.permute.xlu1 %985  ;;  %v982_v28 = vpop.permute.xlu0 %981  ;;  %v1016_v40 = vadd.f32 %v1015_v48, %v1014_v20  ;;  %v1030_v45 = vadd.f32 %v1029_v21, %v1028_v18 }
 0x4f3   : > { %v1046_v25 = vrot.slane %v1045_v14, 4  ;;  %v1002_v26 = vmul.f32 %v986_v42, %v1920_v53  ;;  %v1001_v61 = vmul.f32 %v982_v28, %v1923_v54  ;;  %v1041_v27 = vrot.slane %v1040_v9, 2 }
 0x4f4   : > { %v1036_v39 = vrot.slane %v1035_v38, 1  ;;  %v1009_v53 = vadd.f32 %v1008_v24, %v1007_v15 }
 0x4f5   : > { %v1047_v31 = vadd.f32 %v1046_v25, %v1045_v14  ;;  %v1052_v49 = vadd.f32 %v1002_v26, %v1001_v61  ;;  %v1042_v33 = vadd.f32 %v1041_v27, %v1040_v9 }
 0x4f6   : > { %v1037_v16 = vadd.f32 %v1036_v39, %v1035_v38  ;;  %v1090_v17 = vsel %vm868_vm2, %v1016_v40, %v1009_v53 }
 0x4f7   : > { %v1048_v37 = vrot.slane %v1047_v31, 2  ;;  %v1053_v11 = vrot.slane %v1052_v49, 4  ;;  %v1043_v3 = vrot.slane %v1042_v33, 1  ;;  %v1091_v50 = vsel %vm870_vm3, %v1023_v44, %v1090_v17 }
 0x4f8   : > { %v1092_v6 = vsel %vm872_vm4, %v1030_v45, %v1091_v50 }
 0x4f9   : > { %v1049_v59 = vadd.f32 %v1048_v37, %v1047_v31  ;;  %v1054_v43 = vadd.f32 %v1053_v11, %v1052_v49  ;;  %v1044_v47 = vadd.f32 %v1043_v3, %v1042_v33  ;;  %v1093_v22 = vsel %vm874_vm5, %v1037_v16, %v1092_v6 }
 0x4fb   : > { %v1050_v54 = vrot.slane %v1049_v59, 1  ;;  %v1055_v46 = vrot.slane %v1054_v43, 2  ;;  %v1094_v52 = vsel %vm876_vm6, %v1044_v47, %v1093_v22 }
 0x4fd   : > { %v1056_v7 = vadd.f32 %v1055_v46, %v1054_v43  ;;  %v1051_v8 = vadd.f32 %v1050_v54, %v1049_v59 }
 0x4ff   : > { %v1057_v51 = vrot.slane %v1056_v7, 1  ;;  %v1095_v55 = vsel %vm878_vm7, %v1051_v8, %v1094_v52 }
 0x501   : > { %v1058_v23 = vadd.f32 %v1057_v51, %v1056_v7 }
 0x503   : > { %v1096_v56 = vsel %vm880_vm8, %v1058_v23, %v1095_v55 }
 0x504   : > { %1425 = vmatmul.mubr.f32.vlgmr.msra.gmra.mrb[2].mxu0 %v1096_v56 }
 0x5d7   : > { %v1164_v58 = vpop.f32.mrb[2].mxu0 }
 0x5d8   : > { %v1165_v62 = vadd.f32 %v1265_v60, %v1164_v58  ;;  %v1426_v35 = vpop.f32.mrb[3].mxu0 }
 0x5da   : > { %1168 = vst [vmem:[%s314_s13] sm:$0xff] %v1165_v62 }
 0x5db   : > { %1562 = shalt.err (!%p1559_p4)
}
 0x5dc   : > { %s1563_s23 = scalar_lea.hbm %s2068_s19, 128  ;;  %s1567_s12 = scalar_lea.hbm %s2118_s8, 256 }
 0x5dd   : > { %p1564_p7 = scmp.ne.s32.totalorder %s2068_s19, %s1563_s23  ;;  %p1568_p10 = scmp.lt.u32.totalorder %s2068_s19, %s2118_s8 }
 0x5de   : > { %p1569_p11 = scmp.lt.u32.totalorder %s1567_s12, %s1563_s23  ;;  %p1571_p13 = scmp.lt.u32.totalorder %s1563_s23, %s2068_s19 }
 0x5df   : > { %p1565_p8 = pnand %p1564_p7, %p1702_p5 }
 0x5e0   : > { %p1570_p12 = por %p1569_p11, %p1568_p10 }
 0x5e1   : > { %p1566_p9 = pneg %p1565_p8 }
 0x5e2   : > { %p1572_p0 = por %p1571_p13, %p1570_p12 }
 0x5e4   : > { %p1573_p1 = pnand %p1572_p0, %p1566_p9 }
 0x5e6   : > { %1576 = shalt.err (!%p1573_p1)
}
 0x5e7   : > { %1499 = dma.vmem_to_hbm [thread:$0]  (%p1702_p5), %s2070_s17, 128, %s2068_s19, %s1170_s20  }
 0x5e8 PF: > { %p1505_p2 = scmp.ge.s32.totalorder %s1611_s30, 2  ;;  %s1195_s18 = sand.u32 1, %s1599_s27  }
 0x5e9   : > { %s1196_s21 = scalar_lea.sflag [#allocation3], %s1195_s18 }
 0x5ea   : > { %p1502_p3 = pnand %p1505_p2, %p1706_p6 }
 0x5ec   : > { %1594 = dma.done.wait (!%p1502_p3), %s1196_s21, 128  }
 0x5ed   : > { %1596 = vsyncadd (!%p1502_p3), %s1196_s21, 4294967168  ;;  %p18_p4 = scmp.ge.s32.totalorder %s1689_s11, 4   ;;  %s2121_s27 = smov %s1603_s28 }
 0x5ee   : > { %s2122_s28 = smov %s1607_s29  ;;  %s2123_s29 = smov %s1700_s14 }
 0x5ef   : > { %s2124_s30 = smov %s1689_s11  ;;  %20 = sbr.rel (!%p18_p4) target bundleno = 3 (0x3), region = 90 }
 0x5f6   :  { %1201 = vsyncpa [#allocation3], 1 }
 0x5f7   :  { %1203 = vsyncpa [#allocation3 + $0x1], 1 }

</bundles_post_ra>
